<compile_context>
chip_gen: v6e
topology: v6e:2x2x1
jax: 0.10.0
libtpu: 0.0.40
codegen_flags: <defaults>
</compile_context>

<pallas_src>
import functools

import jax
import jax.numpy as jnp
from jax.experimental import pallas as pl
from jax.experimental.pallas import tpu as pltpu


def _round_up(x, m):
    return (x + m - 1) // m * m


def nnnet_kernel(x_ref, w1_ref, b1_ref, w2_ref, b2_ref, o_ref):
    # fc1: (tb, n_in) @ (n_in, n_hidden_pad) + (1, n_hidden_pad), f32 accumulate.
    h = jnp.dot(x_ref[...], w1_ref[...], preferred_element_type=jnp.float32)
    h = jnp.tanh(h + b1_ref[...])          # bias + tanh in f32 (v5e-safe, EUP)
    # fc2: (tb, n_hidden_pad) @ (n_hidden_pad, n_out_pad), f32 accumulate.
    y = jnp.dot(h.astype(w2_ref.dtype), w2_ref[...],
                preferred_element_type=jnp.float32)
    # Store only the real output columns; out block's last dim == full n_out,
    # so the store is a (masked) write of exactly the real HBM output stream.
    n_out = o_ref.shape[-1]
    o_ref[...] = (y[:, :n_out] + b2_ref[...]).astype(o_ref.dtype)


@functools.partial(jax.jit, static_argnames=("tb_max",))
def nnnet_forward(x, w1, b1, w2, b2, *, tb_max=1024):
    """x: (B, n_in); w1: (n_in, n_hidden); b1: (n_hidden,);
       w2: (n_hidden, n_out); b2: (n_out,)  ->  (B, n_out)"""
    B, n_in = x.shape
    n_hidden = w1.shape[1]
    n_out = w2.shape[1]
    itemsize = x.dtype.itemsize

    # ---- batch tile selection ----------------------------------------------
    # Few, fat tiles to amortize the ~0.35us/step overhead, but:
    #   (a) at most 7 padded rows on the trailing tile (round tb, not B),
    #   (b) >= 2 tiles whenever the batch is splittable (v7x megacore).
    n_tiles = pl.cdiv(B, tb_max)
    if n_tiles == 1 and B >= 16:
        n_tiles = 2
    tb = _round_up(pl.cdiv(B, n_tiles), 8)   # multiple of 8 for f32 sublanes
    grid = (pl.cdiv(B, tb),)

    # ---- pad the hidden dim to a lane-dense multiple of 128 (free in vregs) -
    n_hidden_pad = _round_up(n_hidden, 128)
    # ---- pad W2's N dim for MXU fill; the HBM output itself stays unpadded --
    n_out_pad = _round_up(n_out, 128)
    if n_hidden_pad != n_hidden:
        w1 = jnp.pad(w1, ((0, 0), (0, n_hidden_pad - n_hidden)))
        b1 = jnp.pad(b1, ((0, n_hidden_pad - n_hidden),))
        w2 = jnp.pad(w2, ((0, n_hidden_pad - n_hidden), (0, 0)))
    if n_out_pad != n_out:
        w2 = jnp.pad(w2, ((0, 0), (0, n_out_pad - n_out)))

    b1_2d = b1.reshape(1, n_hidden_pad)
    b2_2d = b2.reshape(1, n_out)

    # ---- VMEM budget (double-buffered tiles + resident weights + fused h/y) -
    weight_bytes = (w1.size + b1_2d.size + w2.size + b2_2d.size) * itemsize
    tile_bytes = (
        2 * tb * n_in * itemsize          # x tile (double-buffered)
        + 2 * tb * n_out * itemsize       # out tile (double-buffered)
        + 2 * weight_bytes                # weights/biases (default buffering)
        + tb * n_hidden_pad * 4           # fused h intermediate (f32)
        + tb * n_out_pad * 4              # fused y intermediate (f32)
    )
    vmem_limit = int(min(max(2 * tile_bytes, 32 << 20), 48 << 20))

    cost = pl.CostEstimate(
        flops=2 * B * n_in * n_hidden_pad + 2 * B * n_hidden_pad * n_out_pad,
        transcendentals=B * n_hidden_pad,
        bytes_accessed=(x.size + w1.size + b1_2d.size + w2.size + b2_2d.size
                        + B * n_out) * itemsize,
    )

    return pl.pallas_call(
        nnnet_kernel,
        out_shape=jax.ShapeDtypeStruct((B, n_out), x.dtype),
        grid_spec=pl.GridSpec(
            grid=grid,
            in_specs=[
                # x tile marches with the grid index (trailing block may be
                # partial; its junk rows never reach HBM).
                pl.BlockSpec((tb, n_in), lambda i: (i, 0)),
                # Weights / biases stay VMEM-resident across all steps.
                pl.BlockSpec((n_in, n_hidden_pad), lambda i: (0, 0)),
                pl.BlockSpec((1, n_hidden_pad), lambda i: (0, 0)),
                pl.BlockSpec((n_hidden_pad, n_out_pad), lambda i: (0, 0)),
                pl.BlockSpec((1, n_out), lambda i: (0, 0)),
            ],
            out_specs=pl.BlockSpec((tb, n_out), lambda i: (i, 0)),
        ),
        compiler_params=pltpu.CompilerParams(
            # Batch tiles are independent -> shard across TCs on v7x.
            dimension_semantics=("parallel",),
            vmem_limit_bytes=vmem_limit,
        ),
        cost_estimate=cost,
    )(x, w1, b1_2d, w2, b2_2d)


def init_params(key, n_in, n_hidden, n_out):
    # Mimic nn.Linear default init: U(-1/sqrt(fan_in), 1/sqrt(fan_in)).
    k1, k2, k3, k4 = jax.random.split(key, 4)
    lim1 = 1.0 / jnp.sqrt(n_in)
    lim2 = 1.0 / jnp.sqrt(n_hidden)
    w1 = jax.random.uniform(k1, (n_in, n_hidden), jnp.float32, -lim1, lim1)
    b1 = jax.random.uniform(k2, (n_hidden,), jnp.float32, -lim1, lim1)
    w2 = jax.random.uniform(k3, (n_hidden, n_out), jnp.float32, -lim2, lim2)
    b2 = jax.random.uniform(k4, (n_out,), jnp.float32, -lim2, lim2)
    return w1, b1, w2, b2


if __name__ == "__main__":
    key = jax.random.PRNGKey(0)
    k_x, k_p = jax.random.split(key)

    batch, n_in, n_hidden, n_out = 8, 32, 64, 16
    x = jax.random.normal(k_x, (batch, n_in), jnp.float32)
    w1, b1, w2, b2 = init_params(k_p, n_in, n_hidden, n_out)

    out = jax.block_until_ready(nnnet_forward(x, w1, b1, w2, b2))

    # Reference check in plain JAX (same math as the PyTorch forward).
    ref = jnp.tanh(x @ w1 + b1) @ w2 + b2
    assert out.shape == (batch, n_out)
    assert jnp.allclose(out, ref, atol=1e-5, rtol=1e-5)

    # Batch that forces >1 tile and a partial trailing block (no wrapper
    # pad / slice passes anymore).
    x2 = jax.random.normal(jax.random.PRNGKey(1), (37, n_in), jnp.float32)
    out2 = jax.block_until_ready(nnnet_forward(x2, w1, b1, w2, b2))
    ref2 = jnp.tanh(x2 @ w1 + b1) @ w2 + b2
    assert out2.shape == (37, n_out)
    assert jnp.allclose(out2, ref2, atol=1e-5, rtol=1e-5)

    print("KERNEL_OK")
</pallas_src>

<mosaic_0001>
module attributes {stable_mosaic.version = 11 : i64} {
  func.func @nnnet_kernel(%arg0: i32, %arg1: memref<8x32xf32, #tpu.memory_space<vmem>>, %arg2: memref<32x128xf32, #tpu.memory_space<vmem>>, %arg3: memref<1x128xf32, #tpu.memory_space<vmem>>, %arg4: memref<128x128xf32, #tpu.memory_space<vmem>>, %arg5: memref<1x16xf32, #tpu.memory_space<vmem>>, %arg6: memref<8x16xf32, #tpu.memory_space<vmem>>) attributes {dimension_semantics = [#tpu.dimension_semantics<parallel>], iteration_bounds = array<i64: 1>, scalar_prefetch = 0 : i64, scratch_operands = 0 : i64, tpu.core_type = #tpu.core_type<tc>, window_params = [{transform_indices = @transform_0, window_bounds = array<i64: 8, 32>}, {pipeline_mode = #tpu.pipeline_mode<synchronous>, transform_indices = @transform_1, window_bounds = array<i64: 32, 128>}, {pipeline_mode = #tpu.pipeline_mode<synchronous>, transform_indices = @transform_2, window_bounds = array<i64: 1, 128>}, {pipeline_mode = #tpu.pipeline_mode<synchronous>, transform_indices = @transform_3, window_bounds = array<i64: 128, 128>}, {pipeline_mode = #tpu.pipeline_mode<synchronous>, transform_indices = @transform_4, window_bounds = array<i64: 1, 16>}, {transform_indices = @transform_5, window_bounds = array<i64: 8, 16>}]} {
    %c0 = arith.constant 0 : index
    %c0_0 = arith.constant 0 : index
    %0 = vector.load %arg1[%c0, %c0_0] : memref<8x32xf32, #tpu.memory_space<vmem>>, vector<8x32xf32>
    %c0_1 = arith.constant 0 : index
    %c0_2 = arith.constant 0 : index
    %1 = vector.load %arg2[%c0_1, %c0_2] : memref<32x128xf32, #tpu.memory_space<vmem>>, vector<32x128xf32>
    %cst = arith.constant dense<0.000000e+00> : vector<8x128xf32>
    %2 = tpu.matmul %0, %1, %cst {dimension_numbers = #tpu.dot_dimension_numbers<[1], [0], [0], [1], [0, 0, 1, 1], [], []>} : vector<8x32xf32>, vector<32x128xf32>, vector<8x128xf32> -> vector<8x128xf32>
    %c0_3 = arith.constant 0 : index
    %c0_4 = arith.constant 0 : index
    %3 = vector.load %arg3[%c0_3, %c0_4] : memref<1x128xf32, #tpu.memory_space<vmem>>, vector<1x128xf32>
    %4 = vector.broadcast %3 : vector<1x128xf32> to vector<8x128xf32>
    %5 = arith.addf %2, %4 : vector<8x128xf32>
    %6 = math.tanh %5 : vector<8x128xf32>
    %c0_5 = arith.constant 0 : index
    %c0_6 = arith.constant 0 : index
    %7 = vector.load %arg4[%c0_5, %c0_6] : memref<128x128xf32, #tpu.memory_space<vmem>>, vector<128x128xf32>
    %cst_7 = arith.constant dense<0.000000e+00> : vector<8x128xf32>
    %8 = tpu.matmul %6, %7, %cst_7 {dimension_numbers = #tpu.dot_dimension_numbers<[1], [0], [0], [1], [0, 0, 1, 1], [], []>} : vector<8x128xf32>, vector<128x128xf32>, vector<8x128xf32> -> vector<8x128xf32>
    %9 = vector.extract_strided_slice %8 {offsets = [0, 0], sizes = [8, 16], strides = [1, 1]} : vector<8x128xf32> to vector<8x16xf32>
    %c0_8 = arith.constant 0 : index
    %c0_9 = arith.constant 0 : index
    %10 = vector.load %arg5[%c0_8, %c0_9] : memref<1x16xf32, #tpu.memory_space<vmem>>, vector<1x16xf32>
    %11 = vector.broadcast %10 : vector<1x16xf32> to vector<8x16xf32>
    %12 = arith.addf %9, %11 : vector<8x16xf32>
    %c0_10 = arith.constant 0 : index
    %c0_11 = arith.constant 0 : index
    %13 = vector.load %arg6[%c0_10, %c0_11] : memref<8x16xf32, #tpu.memory_space<vmem>>, vector<8x16xf32>
    tpu.vector_store %arg6[%c0_10, %c0_11], %12 {strides = array<i32>} : memref<8x16xf32, #tpu.memory_space<vmem>>, vector<8x16xf32>,
    return
  }
  func.func @transform_0(%arg0: i32) -> (i32, i32) {
    %c0_i32 = arith.constant 0 : i32
    %c0_i32_0 = arith.constant 0 : i32
    return %arg0, %c0_i32 : i32, i32
  }
  func.func @transform_1(%arg0: i32) -> (i32, i32) {
    %c0_i32 = arith.constant 0 : i32
    %c0_i32_0 = arith.constant 0 : i32
    %c0_i32_1 = arith.constant 0 : i32
    return %c0_i32, %c0_i32_0 : i32, i32
  }
  func.func @transform_2(%arg0: i32) -> (i32, i32) {
    %c0_i32 = arith.constant 0 : i32
    %c0_i32_0 = arith.constant 0 : i32
    %c0_i32_1 = arith.constant 0 : i32
    return %c0_i32, %c0_i32_0 : i32, i32
  }
  func.func @transform_3(%arg0: i32) -> (i32, i32) {
    %c0_i32 = arith.constant 0 : i32
    %c0_i32_0 = arith.constant 0 : i32
    %c0_i32_1 = arith.constant 0 : i32
    return %c0_i32, %c0_i32_0 : i32, i32
  }
  func.func @transform_4(%arg0: i32) -> (i32, i32) {
    %c0_i32 = arith.constant 0 : i32
    %c0_i32_0 = arith.constant 0 : i32
    %c0_i32_1 = arith.constant 0 : i32
    return %c0_i32, %c0_i32_0 : i32, i32
  }
  func.func @transform_5(%arg0: i32) -> (i32, i32) {
    %c0_i32 = arith.constant 0 : i32
    %c0_i32_0 = arith.constant 0 : i32
    return %arg0, %c0_i32 : i32, i32
  }
}

</mosaic_0001>

<bundles_post_ra>
// kernel: nnnet_forward.1
= control target key start
LH: loop header
LB: loop body
LE: loop exit
PB: predicated region body
PF: predicated region fallthrough
CT: control target
= control target key end

     0   :  { %v316_v1 = vmov 0.0   ;;  %vm317_vm0 = vmmov 0   ;;  %s445_s0 = inlined_call_operand.vmem [shape: f32[8,32], index: 0, kind: input, shape index: {}]   ;;  %s446_s1 = inlined_call_operand.vmem [shape: f32[32,128], index: 1, kind: input, shape index: {}]   ;;  %s447_s2 = inlined_call_operand.vmem [shape: f32[1,128], index: 2, kind: input, shape index: {}]   ;;  %s448_s3 = inlined_call_operand.vmem [shape: f32[128,128], index: 3, kind: input, shape index: {}]   ;;  %s449_s4 = inlined_call_operand.vmem [shape: f32[1,16], index: 4, kind: input, shape index: {}]   ;;  %s450_s5 = inlined_call_operand.hbm [shape: f32[8,16], index: 5, kind: output, shape index: {}]  }
   0x1   :  { %v25_v0 = vld [vmem:[%s446_s1 + $0x18] sm:$0xff]  ;;  %243 = vmatprep.subr.mxu0 %v316_v1  ;;  %v24_v2 = vld [vmem:[%s446_s1 + $0x10] sm:$0xff]  ;;  %251 = vmatprep.mubr.msk.f32.mxu0 %vm317_vm0, %v316_v1  ;;  %v23_v5 = vld [vmem:[%s446_s1 + $0x8] sm:$0xff] }
   0x2   :  { %v123_v3 = vld [vmem:[%s448_s3 + $0x78] sm:$0xff]  ;;  %244 = vmatpush3.msra.mxu0 %v25_v0  ;;  %254 = vmatprep.subr.mxu1 %v316_v1  ;;  %v122_v4 = vld [vmem:[%s448_s3 + $0x70] sm:$0xff]  ;;  %v121_v6 = vld [vmem:[%s448_s3 + $0x68] sm:$0xff] }
   0x3   :  { %245 = vmatprep.subr.mxu0 %v316_v1  ;;  %255 = vmatpush3.msra.mxu1 %v123_v3 }
   0x4   :  { %246 = vmatpush3.msra.mxu0 %v24_v2  ;;  %256 = vmatprep.subr.mxu1 %v316_v1 }
   0x5   :  { %10 = vsyncpa [#allocation3], 0  ;;  %247 = vmatprep.subr.mxu0 %v316_v1  ;;  %v22_v7 = vld [vmem:[%s446_s1] sm:$0xff]  ;;  %257 = vmatpush3.msra.mxu1 %v122_v4  ;;  %vm33_vm1 = vcmask 261120   ;;  %v119_v10 = vld [vmem:[%s448_s3 + $0x58] sm:$0xff]  ;;  %s318_s11 = smov [#allocation2]  }
   0x6   :  { %248 = vmatpush3.msra.mxu0 %v23_v5  ;;  %v21_v8 = vld [vmem:[%s445_s0] sm:$0xff]  ;;  %258 = vmatprep.subr.mxu1 %v316_v1  ;;  %v118_v11 = vld [vmem:[%s448_s3 + $0x50] sm:$0xff]  ;;  %v117_v12 = vld [vmem:[%s448_s3 + $0x48] sm:$0xff]  ;;  %vm202_vm2 = vcmask 130048  }
   0x7   :  { %v120_v9 = vld [vmem:[%s448_s3 + $0x60] sm:$0xff]  ;;  %249 = vmatprep.subr.mxu0 %v316_v1  ;;  %259 = vmatpush3.msra.mxu1 %v121_v6  ;;  %v115_v14 = vld [vmem:[%s448_s3 + $0x38] sm:$0xff]  ;;  %v114_v15 = vld [vmem:[%s448_s3 + $0x30] sm:$0xff] }
   0x8   :  { %250 = vmatpush3.msra.mxu0 %v22_v7  ;;  %260 = vmatprep.subr.mxu1 %v316_v1  ;;  %v116_v13 = vld [vmem:[%s448_s3 + $0x40] sm:$0xff]  ;;  %v113_v16 = vld [vmem:[%s448_s3 + $0x28] sm:$0xff]  ;;  %v111_v18 = vld [vmem:[%s448_s3 + $0x18] sm:$0xff] }
   0x9   :  { %252 = vmatmul.mubr.msk.f32.vlgmr.msra.gmra.mxu0 %vm33_vm1, %v21_v8  ;;  %261 = vmatpush3.msra.mxu1 %v120_v9  ;;  %v112_v17 = vld [vmem:[%s448_s3 + $0x20] sm:$0xff]  ;;  %v110_v19 = vld [vmem:[%s448_s3 + $0x10] sm:$0xff]  ;;  %v109_v20 = vld [vmem:[%s448_s3 + $0x8] sm:$0xff] }
   0xa   :  { %262 = vmatprep.subr.mxu1 %v316_v1  ;;  %286 = vmatprep.mubr.msk.f32.mxu1 %vm317_vm0, %v316_v1  ;;  %v108_v21 = vld [vmem:[%s448_s3] sm:$0xff]  ;;  %s210_s3 = sshll.u32 %s318_s11, 4  ;;  %s211_s3 = int_to_ptr.vmem [resolvable:$true] %s210_s3 }
   0xb   :  { %263 = vmatpush3.msra.mxu1 %v119_v10  ;;  %v218_v22 = vld [vmem:[%s447_s2] ss:$0 sm:$0xff]  ;;  %s294_s0 = scalar_lea.vmem %s211_s3, 128  ;;  %p299_p1 = scmp.lt.s32.totalorder %s211_s3, %s211_s3 }
   0xc   :  { %264 = vmatprep.subr.mxu1 %v316_v1  ;;  %v220_v27 = vld [vmem:[%s449_s4] ss:$0 sm:$0xff]  ;;  %p295_p0 = scmp.ne.s32.totalorder %s211_s3, %s294_s0  ;;  %p300_p2 = scmp.lt.s32.totalorder %s294_s0, %s294_s0 }
   0xd   :  { %265 = vmatpush3.msra.mxu1 %v118_v11 }
   0xe   :  { %266 = vmatprep.subr.mxu1 %v316_v1  ;;  %p301_p3 = por %p300_p2, %p299_p1 }
   0xf   :  { %267 = vmatpush3.msra.mxu1 %v117_v12 }
  0x10   :  { %268 = vmatprep.subr.mxu1 %v316_v1  ;;  %p302_p4 = pnand %p301_p3, %p295_p0 }
  0x11   :  { %269 = vmatpush3.msra.mxu1 %v116_v13 }
  0x12   :  { %270 = vmatprep.subr.mxu1 %v316_v1 }
  0x13   :  { %271 = vmatpush3.msra.mxu1 %v115_v14 }
  0x14   :  { %272 = vmatprep.subr.mxu1 %v316_v1 }
  0x15   :  { %273 = vmatpush3.msra.mxu1 %v114_v15 }
  0x16   :  { %274 = vmatprep.subr.mxu1 %v316_v1 }
  0x17   :  { %275 = vmatpush3.msra.mxu1 %v113_v16 }
  0x18   :  { %276 = vmatprep.subr.mxu1 %v316_v1 }
  0x19   :  { %277 = vmatpush3.msra.mxu1 %v112_v17 }
  0x1a   :  { %278 = vmatprep.subr.mxu1 %v316_v1 }
  0x1b   :  { %279 = vmatpush3.msra.mxu1 %v111_v18 }
  0x1c   :  { %280 = vmatprep.subr.mxu1 %v316_v1 }
  0x1d   :  { %281 = vmatpush3.msra.mxu1 %v110_v19 }
  0x1e   :  { %282 = vmatprep.subr.mxu1 %v316_v1 }
  0x1f   :  { %283 = vmatpush3.msra.mxu1 %v109_v20 }
  0x20   :  { %284 = vmatprep.subr.mxu1 %v316_v1 }
  0x21   :  { %285 = vmatpush3.msra.mxu1 %v108_v21 }
  0xc9   :  { %v103_v23 = vpop.f32.mrf.mxu0 }
  0xca   :  { %v104_v24 = vadd.f32 %v218_v22, %v103_v23 }
  0xcb   :  { %v253_v25 = vpop.f32.mrf.mxu0 }
  0xcc   :  { %292 = vtanh.f32 %v104_v24 }
  0xd9   :  { %v293_v26 = vpop.eup %292 }
  0xda   :  { %287 = vmatmul.mubr.f32.vlgmr.msra.gmra.mxu1 %v293_v26 }
 0x19a   :  { %v190_v28 = vpop.f32.mrf.mxu1 }
 0x19b   :  { %v201_v29 = vadd.f32 %v220_v27, %v190_v28 }
 0x19c   :  { %v288_v30 = vpop.f32.mrf.mxu1 }
 0x19d   :  { %203 = vst.msk [vmem:[#allocation2] sm:$0xff] %vm202_vm2, %v201_v29 }
 0x19e   :  { %305 = shalt.err (!%p302_p4)
}
 0x19f   :  { %213 = dma.vmem_to_hbm [thread:$0]  %s211_s3, 128, %s450_s5, [#allocation3]  }
 0x1a0   :  { %314 = dma.done.wait [#allocation3], 128  }
 0x1a1   :  { %315 = vsyncadd [#allocation3], 4294967168 }
 0x1a2   :  { %217 = vsyncpa [#allocation3], 1 }

</bundles_post_ra>
